<compile_context>
chip_gen: v5e
topology: v5e:2x2
jax: 0.10.0
libtpu: 0.0.40
codegen_flags: <defaults>
</compile_context>

<pallas_src>
import functools
import math

import jax
import jax.numpy as jnp
from jax import lax
from jax.experimental import pallas as pl
from jax.experimental.pallas import tpu as pltpu


def _mhsa_kernel(*refs, num_heads, head_dim, hidden, single_q_tile):
    f32 = jnp.float32
    bf16 = jnp.bfloat16
    scale = 1.0 / math.sqrt(head_dim)

    if single_q_tile:
        (x_ref, wqkv_ref, bqkv_ref, wo_ref, bo_ref, o_ref, ctx_ref) = refs
        # One grid step covers the whole sequence: fully fused QKV projection.
        x = x_ref[0]                                                # (S, H) bf16
        qkv = jnp.dot(x, wqkv_ref[...], preferred_element_type=f32)
        qkv = qkv + bqkv_ref[...]                                   # (S, 3H) f32
        q = qkv[:, :hidden]
        k = qkv[:, hidden:2 * hidden].astype(bf16)
        v = qkv[:, 2 * hidden:].astype(bf16)
    else:
        (xq_ref, xkv_ref, wqkv_ref, bqkv_ref, wo_ref, bo_ref,
         o_ref, ctx_ref, kv_ref) = refs

        # K/V projection for this batch element is computed once (first query
        # tile) into a resident bf16 VMEM scratch and reused by later tiles.
        @pl.when(pl.program_id(1) == 0)
        def _():
            xkv = xkv_ref[0]                                        # (S, H) bf16
            kv = jnp.dot(xkv, wqkv_ref[:, hidden:],
                         preferred_element_type=f32)
            kv = kv + bqkv_ref[:, hidden:]                          # (S, 2H) f32
            kv_ref[...] = kv.astype(bf16)

        xq = xq_ref[0]                                              # (tq, H) bf16
        q = jnp.dot(xq, wqkv_ref[:, :hidden], preferred_element_type=f32)
        q = q + bqkv_ref[:, :hidden]
        k = kv_ref[:, :hidden]                                      # (S, H) bf16
        v = kv_ref[:, hidden:]                                      # (S, H) bf16

    # Fold the softmax scale into q once; bf16 operands for the attention matmuls.
    q = (q * scale).astype(bf16)

    # Contract the last dim of both operands: (tq, d) x (S, d) -> (tq, S).
    dn_qk = (((1,), (1,)), ((), ()))

    # Static unroll over heads; per-head context lands in the ctx scratch slice.
    # NOTE: head slices may be narrower than 128 lanes for small head_dim; the
    # resulting masked loads/stores are cheap relative to the MXU work here.
    for h in range(num_heads):
        lo = h * head_dim
        hi = lo + head_dim
        qh = q[:, lo:hi]
        kh = k[:, lo:hi]
        vh = v[:, lo:hi]
        s = lax.dot_general(qh, kh, dn_qk, preferred_element_type=f32)   # (tq, S)
        # Numerically stable softmax in f32; reciprocal on the EUP.
        m = jnp.max(s, axis=-1, keepdims=True)
        e = jnp.exp(s - m)
        inv_l = pl.reciprocal(jnp.sum(e, axis=-1, keepdims=True), approx=True)
        p = (e * inv_l).astype(bf16)
        ctx_ref[:, lo:hi] = jnp.dot(p, vh, preferred_element_type=f32)   # (tq, d)

    ctx = ctx_ref[...].astype(bf16)
    out = jnp.dot(ctx, wo_ref[...], preferred_element_type=f32) + bo_ref[...]
    o_ref[0] = out.astype(o_ref.dtype)


def _pick_q_tile(seq_len):
    """Query-tile size: whole sequence for small S, otherwise a clean divisor."""
    if seq_len <= 256:
        return seq_len
    for cand in (256, 128, 64, 32, 16, 8):
        if seq_len % cand == 0:
            return cand
    return seq_len


def mhsa_pallas(x, params, num_heads):
    """x: (B, S, H) float32. params: wq/wk/wv/wo (H,H) pre-transposed, biases (1,H)."""
    B, S, H = x.shape
    assert H % num_heads == 0, "hidden_size must be divisible by num_heads"
    head_dim = H // num_heads

    tq = _pick_q_tile(S)
    q_tiles = S // tq
    single_q_tile = q_tiles == 1

    bf16 = jnp.bfloat16
    x_b = x.astype(bf16)
    wqkv = jnp.concatenate(
        [params["wq"], params["wk"], params["wv"]], axis=1).astype(bf16)    # (H, 3H)
    bqkv = jnp.concatenate(
        [params["bq"], params["bk"], params["bv"]], axis=1).astype(jnp.float32)
    wo = params["wo"].astype(bf16)
    bo = params["bo"].astype(jnp.float32)

    kernel = functools.partial(
        _mhsa_kernel, num_heads=num_heads, head_dim=head_dim,
        hidden=H, single_q_tile=single_q_tile)

    const2d = lambda shape: pl.BlockSpec(shape, lambda b, qi: (0, 0))

    if single_q_tile:
        x_specs = [pl.BlockSpec((1, S, H), lambda b, qi: (b, 0, 0))]
        x_args = [x_b]
    else:
        x_specs = [pl.BlockSpec((1, tq, H), lambda b, qi: (b, qi, 0)),   # query rows
                   pl.BlockSpec((1, S, H), lambda b, qi: (b, 0, 0))]     # K/V rows
        x_args = [x_b, x_b]

    in_specs = x_specs + [
        const2d((H, 3 * H)), const2d((1, 3 * H)),   # fused Wqkv, bqkv
        const2d((H, H)), const2d((1, H)),           # Wo, bo
    ]

    scratch_shapes = [pltpu.VMEM((tq, H), jnp.float32)]                  # ctx
    if not single_q_tile:
        scratch_shapes.append(pltpu.VMEM((S, 2 * H), jnp.bfloat16))      # resident K/V

    # The K/V residency scratch requires sequential visits of the qi axis for a
    # fixed batch element, so that axis is "arbitrary" in the multi-tile case.
    dims = ("parallel", "parallel") if single_q_tile else ("parallel", "arbitrary")

    # Advisory cost hint for XLA scheduling around the custom call.
    flops = B * (8 * S * H * H + 4 * S * S * H)
    transcendentals = B * num_heads * S * S
    bytes_accessed = (x_b.size * 2 + wqkv.size * 2 + wo.size * 2
                      + bqkv.size * 4 + bo.size * 4 + B * S * H * x.dtype.itemsize)
    cost = pl.CostEstimate(flops=flops, transcendentals=transcendentals,
                           bytes_accessed=bytes_accessed)

    # Explicit VMEM budget: double-buffered blocks + per-step intermediates +
    # resident scratch, capped with headroom under v7x's 64 MiB physical VMEM.
    in_blk = (tq * H + S * H) * 2 + H * 3 * H * 2 + 3 * H * 4 + H * H * 2 + H * 4
    out_blk = tq * H * 4
    inter = (tq + S) * 3 * H * 4 + tq * S * 4 + tq * H * 4 + S * 2 * H * 2
    vmem_limit = int(min(48 * 2 ** 20,
                         max(16 * 2 ** 20, 2 * (2 * (in_blk + out_blk) + inter))))

    return pl.pallas_call(
        kernel,
        out_shape=jax.ShapeDtypeStruct((B, S, H), x.dtype),
        grid_spec=pltpu.PrefetchScalarGridSpec(
            num_scalar_prefetch=0,
            grid=(B, q_tiles),
            in_specs=in_specs,
            out_specs=pl.BlockSpec((1, tq, H), lambda b, qi: (b, qi, 0)),
            scratch_shapes=scratch_shapes,
        ),
        compiler_params=pltpu.CompilerParams(
            dimension_semantics=dims,
            vmem_limit_bytes=vmem_limit),
        cost_estimate=cost,
    )(*x_args, wqkv, bqkv, wo, bo)


def mhsa_reference(x, params, num_heads):
    """Pure-JAX reference mirroring the PyTorch forward (eval mode), in f32."""
    B, S, H = x.shape
    d = H // num_heads
    q = x @ params["wq"] + params["bq"]
    k = x @ params["wk"] + params["bk"]
    v = x @ params["wv"] + params["bv"]
    q = q.reshape(B, S, num_heads, d).transpose(0, 2, 1, 3)
    k = k.reshape(B, S, num_heads, d).transpose(0, 2, 1, 3)
    v = v.reshape(B, S, num_heads, d).transpose(0, 2, 1, 3)
    s = jnp.einsum("bhqd,bhkd->bhqk", q, k) / math.sqrt(d)
    p = jax.nn.softmax(s, axis=-1)
    ctx = jnp.einsum("bhqk,bhkd->bhqd", p, v)
    ctx = ctx.transpose(0, 2, 1, 3).reshape(B, S, H)
    return ctx @ params["wo"] + params["bo"]


def _make_params(key, H):
    keys = jax.random.split(key, 8)

    def linear_params(kw, kb):
        bound = 1.0 / math.sqrt(H)
        w = jax.random.uniform(kw, (H, H), jnp.float32, -bound, bound)
        b = jax.random.uniform(kb, (1, H), jnp.float32, -bound, bound)
        return w, b

    wq, bq = linear_params(keys[0], keys[1])
    wk, bk = linear_params(keys[2], keys[3])
    wv, bv = linear_params(keys[4], keys[5])
    wo, bo = linear_params(keys[6], keys[7])
    return dict(wq=wq, bq=bq, wk=wk, bk=bk, wv=wv, bv=bv, wo=wo, bo=bo)


if __name__ == "__main__":
    key = jax.random.PRNGKey(0)
    k_param, k_x, k_param2, k_x2 = jax.random.split(key, 4)

    # Small shapes consistent with the module: (batch, seq_len, hidden)
    B, S, H = 2, 8, 32
    num_heads = 4
    dropout = 0.1  # identity at inference

    params = _make_params(k_param, H)
    x = jax.random.normal(k_x, (B, S, H), jnp.float32)

    out = mhsa_pallas(x, params, num_heads)
    out = jax.block_until_ready(out)

    ref = mhsa_reference(x, params, num_heads)
    assert out.shape == (B, S, H)
    # bf16 MXU operands (f32 accumulation/softmax) -> looser tolerance than pure f32.
    assert jnp.allclose(out, ref, atol=5e-2, rtol=5e-2), "mismatch vs reference"

    # Second check exercising the multi-query-tile path (resident K/V scratch).
    B2, S2, H2, heads2 = 1, 512, 256, 4
    params2 = _make_params(k_param2, H2)
    x2 = jax.random.normal(k_x2, (B2, S2, H2), jnp.float32)
    out2 = jax.block_until_ready(mhsa_pallas(x2, params2, heads2))
    ref2 = mhsa_reference(x2, params2, heads2)
    assert out2.shape == (B2, S2, H2)
    assert jnp.allclose(out2, ref2, atol=5e-2, rtol=5e-2), "mismatch (tiled path)"

    print("KERNEL_OK")
</pallas_src>

<mosaic_0001>
module attributes {stable_mosaic.version = 11 : i64} {
  func.func @_mhsa_kernel(%arg0: i32, %arg1: i32, %arg2: memref<1x8x32xbf16, #tpu.memory_space<vmem>>, %arg3: memref<32x96xbf16, #tpu.memory_space<vmem>>, %arg4: memref<1x96xf32, #tpu.memory_space<vmem>>, %arg5: memref<32x32xbf16, #tpu.memory_space<vmem>>, %arg6: memref<1x32xf32, #tpu.memory_space<vmem>>, %arg7: memref<1x8x32xf32, #tpu.memory_space<vmem>>, %arg8: memref<8x32xf32, #tpu.memory_space<vmem>>) attributes {dimension_semantics = [#tpu.dimension_semantics<parallel>, #tpu.dimension_semantics<parallel>], iteration_bounds = array<i64: 2, 1>, scalar_prefetch = 0 : i64, scratch_operands = 1 : i64, tpu.core_type = #tpu.core_type<tc>, window_params = [{transform_indices = @transform_0, window_bounds = array<i64: 1, 8, 32>}, {pipeline_mode = #tpu.pipeline_mode<synchronous>, transform_indices = @transform_1, window_bounds = array<i64: 32, 96>}, {pipeline_mode = #tpu.pipeline_mode<synchronous>, transform_indices = @transform_2, window_bounds = array<i64: 1, 96>}, {pipeline_mode = #tpu.pipeline_mode<synchronous>, transform_indices = @transform_3, window_bounds = array<i64: 32, 32>}, {pipeline_mode = #tpu.pipeline_mode<synchronous>, transform_indices = @transform_4, window_bounds = array<i64: 1, 32>}, {transform_indices = @transform_5, window_bounds = array<i64: 1, 8, 32>}]} {
    %c0 = arith.constant 0 : index
    %c0_0 = arith.constant 0 : index
    %c0_1 = arith.constant 0 : index
    %0 = vector.load %arg2[%c0, %c0_0, %c0_1] : memref<1x8x32xbf16, #tpu.memory_space<vmem>>, vector<1x8x32xbf16>
    %1 = vector.shape_cast %0 : vector<1x8x32xbf16> to vector<8x32xbf16>
    %c0_2 = arith.constant 0 : index
    %c0_3 = arith.constant 0 : index
    %2 = vector.load %arg3[%c0_2, %c0_3] : memref<32x96xbf16, #tpu.memory_space<vmem>>, vector<32x96xbf16>
    %cst = arith.constant dense<0.000000e+00> : vector<8x96xf32>
    %3 = tpu.matmul %1, %2, %cst {dimension_numbers = #tpu.dot_dimension_numbers<[1], [0], [0], [1], [0, 0, 1, 1], [], []>} : vector<8x32xbf16>, vector<32x96xbf16>, vector<8x96xf32> -> vector<8x96xf32>
    %c0_4 = arith.constant 0 : index
    %c0_5 = arith.constant 0 : index
    %4 = vector.load %arg4[%c0_4, %c0_5] : memref<1x96xf32, #tpu.memory_space<vmem>>, vector<1x96xf32>
    %5 = vector.broadcast %4 : vector<1x96xf32> to vector<8x96xf32>
    %6 = arith.addf %3, %5 : vector<8x96xf32>
    %7 = vector.extract_strided_slice %6 {offsets = [0, 0], sizes = [8, 32], strides = [1, 1]} : vector<8x96xf32> to vector<8x32xf32>
    %8 = vector.extract_strided_slice %6 {offsets = [0, 32], sizes = [8, 32], strides = [1, 1]} : vector<8x96xf32> to vector<8x32xf32>
    %9 = arith.truncf %8 : vector<8x32xf32> to vector<8x32xbf16>
    %10 = vector.extract_strided_slice %6 {offsets = [0, 64], sizes = [8, 32], strides = [1, 1]} : vector<8x96xf32> to vector<8x32xf32>
    %11 = arith.truncf %10 : vector<8x32xf32> to vector<8x32xbf16>
    %cst_6 = arith.constant 0.353553385 : f32
    %12 = vector.broadcast %cst_6 : f32 to vector<8x32xf32>
    %13 = arith.mulf %7, %12 : vector<8x32xf32>
    %14 = arith.truncf %13 : vector<8x32xf32> to vector<8x32xbf16>
    %15 = vector.extract_strided_slice %14 {offsets = [0, 0], sizes = [8, 8], strides = [1, 1]} : vector<8x32xbf16> to vector<8x8xbf16>
    %16 = vector.extract_strided_slice %9 {offsets = [0, 0], sizes = [8, 8], strides = [1, 1]} : vector<8x32xbf16> to vector<8x8xbf16>
    %17 = vector.extract_strided_slice %11 {offsets = [0, 0], sizes = [8, 8], strides = [1, 1]} : vector<8x32xbf16> to vector<8x8xbf16>
    %cst_7 = arith.constant dense<0.000000e+00> : vector<8x8xf32>
    %18 = tpu.matmul %15, %16, %cst_7 {dimension_numbers = #tpu.dot_dimension_numbers<[1], [1], [0], [0], [0, 0, 1, 0], [], []>} : vector<8x8xbf16>, vector<8x8xbf16>, vector<8x8xf32> -> vector<8x8xf32>
    %cst_8 = arith.constant dense<0xFF800000> : vector<8xf32>
    %19 = vector.multi_reduction <maximumf>, %18, %cst_8 [1] : vector<8x8xf32> to vector<8xf32>
    %20 = vector.shape_cast %19 : vector<8xf32> to vector<8x1xf32>
    %21 = vector.broadcast %20 : vector<8x1xf32> to vector<8x8xf32>
    %22 = arith.subf %18, %21 : vector<8x8xf32>
    %23 = math.exp %22 : vector<8x8xf32>
    %cst_9 = arith.constant dense<0.000000e+00> : vector<8xf32>
    %24 = vector.multi_reduction <add>, %23, %cst_9 [1] : vector<8x8xf32> to vector<8xf32>
    %25 = vector.shape_cast %24 : vector<8xf32> to vector<8x1xf32>
    %26 = tpu.reciprocal %25 {approx = true} : vector<8x1xf32> -> vector<8x1xf32>
    %27 = vector.broadcast %26 : vector<8x1xf32> to vector<8x8xf32>
    %28 = arith.mulf %23, %27 : vector<8x8xf32>
    %29 = arith.truncf %28 : vector<8x8xf32> to vector<8x8xbf16>
    %cst_10 = arith.constant dense<0.000000e+00> : vector<8x8xf32>
    %30 = tpu.matmul %29, %17, %cst_10 {dimension_numbers = #tpu.dot_dimension_numbers<[1], [0], [0], [1], [0, 0, 1, 1], [], []>} : vector<8x8xbf16>, vector<8x8xbf16>, vector<8x8xf32> -> vector<8x8xf32>
    %c0_11 = arith.constant 0 : index
    %c0_12 = arith.constant 0 : index
    %31 = vector.load %arg8[%c0_11, %c0_12] : memref<8x32xf32, #tpu.memory_space<vmem>>, vector<8x8xf32>
    tpu.vector_store %arg8[%c0_11, %c0_12], %30 {strides = array<i32>} : memref<8x32xf32, #tpu.memory_space<vmem>>, vector<8x8xf32>,
    %32 = vector.extract_strided_slice %14 {offsets = [0, 8], sizes = [8, 8], strides = [1, 1]} : vector<8x32xbf16> to vector<8x8xbf16>
    %33 = vector.extract_strided_slice %9 {offsets = [0, 8], sizes = [8, 8], strides = [1, 1]} : vector<8x32xbf16> to vector<8x8xbf16>
    %34 = vector.extract_strided_slice %11 {offsets = [0, 8], sizes = [8, 8], strides = [1, 1]} : vector<8x32xbf16> to vector<8x8xbf16>
    %cst_13 = arith.constant dense<0.000000e+00> : vector<8x8xf32>
    %35 = tpu.matmul %32, %33, %cst_13 {dimension_numbers = #tpu.dot_dimension_numbers<[1], [1], [0], [0], [0, 0, 1, 0], [], []>} : vector<8x8xbf16>, vector<8x8xbf16>, vector<8x8xf32> -> vector<8x8xf32>
    %cst_14 = arith.constant dense<0xFF800000> : vector<8xf32>
    %36 = vector.multi_reduction <maximumf>, %35, %cst_14 [1] : vector<8x8xf32> to vector<8xf32>
    %37 = vector.shape_cast %36 : vector<8xf32> to vector<8x1xf32>
    %38 = vector.broadcast %37 : vector<8x1xf32> to vector<8x8xf32>
    %39 = arith.subf %35, %38 : vector<8x8xf32>
    %40 = math.exp %39 : vector<8x8xf32>
    %cst_15 = arith.constant dense<0.000000e+00> : vector<8xf32>
    %41 = vector.multi_reduction <add>, %40, %cst_15 [1] : vector<8x8xf32> to vector<8xf32>
    %42 = vector.shape_cast %41 : vector<8xf32> to vector<8x1xf32>
    %43 = tpu.reciprocal %42 {approx = true} : vector<8x1xf32> -> vector<8x1xf32>
    %44 = vector.broadcast %43 : vector<8x1xf32> to vector<8x8xf32>
    %45 = arith.mulf %40, %44 : vector<8x8xf32>
    %46 = arith.truncf %45 : vector<8x8xf32> to vector<8x8xbf16>
    %cst_16 = arith.constant dense<0.000000e+00> : vector<8x8xf32>
    %47 = tpu.matmul %46, %34, %cst_16 {dimension_numbers = #tpu.dot_dimension_numbers<[1], [0], [0], [1], [0, 0, 1, 1], [], []>} : vector<8x8xbf16>, vector<8x8xbf16>, vector<8x8xf32> -> vector<8x8xf32>
    %c0_17 = arith.constant 0 : index
    %c8 = arith.constant 8 : index
    %48 = vector.load %arg8[%c0_17, %c8] : memref<8x32xf32, #tpu.memory_space<vmem>>, vector<8x8xf32>
    tpu.vector_store %arg8[%c0_17, %c8], %47 {strides = array<i32>} : memref<8x32xf32, #tpu.memory_space<vmem>>, vector<8x8xf32>,
    %49 = vector.extract_strided_slice %14 {offsets = [0, 16], sizes = [8, 8], strides = [1, 1]} : vector<8x32xbf16> to vector<8x8xbf16>
    %50 = vector.extract_strided_slice %9 {offsets = [0, 16], sizes = [8, 8], strides = [1, 1]} : vector<8x32xbf16> to vector<8x8xbf16>
    %51 = vector.extract_strided_slice %11 {offsets = [0, 16], sizes = [8, 8], strides = [1, 1]} : vector<8x32xbf16> to vector<8x8xbf16>
    %cst_18 = arith.constant dense<0.000000e+00> : vector<8x8xf32>
    %52 = tpu.matmul %49, %50, %cst_18 {dimension_numbers = #tpu.dot_dimension_numbers<[1], [1], [0], [0], [0, 0, 1, 0], [], []>} : vector<8x8xbf16>, vector<8x8xbf16>, vector<8x8xf32> -> vector<8x8xf32>
    %cst_19 = arith.constant dense<0xFF800000> : vector<8xf32>
    %53 = vector.multi_reduction <maximumf>, %52, %cst_19 [1] : vector<8x8xf32> to vector<8xf32>
    %54 = vector.shape_cast %53 : vector<8xf32> to vector<8x1xf32>
    %55 = vector.broadcast %54 : vector<8x1xf32> to vector<8x8xf32>
    %56 = arith.subf %52, %55 : vector<8x8xf32>
    %57 = math.exp %56 : vector<8x8xf32>
    %cst_20 = arith.constant dense<0.000000e+00> : vector<8xf32>
    %58 = vector.multi_reduction <add>, %57, %cst_20 [1] : vector<8x8xf32> to vector<8xf32>
    %59 = vector.shape_cast %58 : vector<8xf32> to vector<8x1xf32>
    %60 = tpu.reciprocal %59 {approx = true} : vector<8x1xf32> -> vector<8x1xf32>
    %61 = vector.broadcast %60 : vector<8x1xf32> to vector<8x8xf32>
    %62 = arith.mulf %57, %61 : vector<8x8xf32>
    %63 = arith.truncf %62 : vector<8x8xf32> to vector<8x8xbf16>
    %cst_21 = arith.constant dense<0.000000e+00> : vector<8x8xf32>
    %64 = tpu.matmul %63, %51, %cst_21 {dimension_numbers = #tpu.dot_dimension_numbers<[1], [0], [0], [1], [0, 0, 1, 1], [], []>} : vector<8x8xbf16>, vector<8x8xbf16>, vector<8x8xf32> -> vector<8x8xf32>
    %c0_22 = arith.constant 0 : index
    %c16 = arith.constant 16 : index
    %65 = vector.load %arg8[%c0_22, %c16] : memref<8x32xf32, #tpu.memory_space<vmem>>, vector<8x8xf32>
    tpu.vector_store %arg8[%c0_22, %c16], %64 {strides = array<i32>} : memref<8x32xf32, #tpu.memory_space<vmem>>, vector<8x8xf32>,
    %66 = vector.extract_strided_slice %14 {offsets = [0, 24], sizes = [8, 8], strides = [1, 1]} : vector<8x32xbf16> to vector<8x8xbf16>
    %67 = vector.extract_strided_slice %9 {offsets = [0, 24], sizes = [8, 8], strides = [1, 1]} : vector<8x32xbf16> to vector<8x8xbf16>
    %68 = vector.extract_strided_slice %11 {offsets = [0, 24], sizes = [8, 8], strides = [1, 1]} : vector<8x32xbf16> to vector<8x8xbf16>
    %cst_23 = arith.constant dense<0.000000e+00> : vector<8x8xf32>
    %69 = tpu.matmul %66, %67, %cst_23 {dimension_numbers = #tpu.dot_dimension_numbers<[1], [1], [0], [0], [0, 0, 1, 0], [], []>} : vector<8x8xbf16>, vector<8x8xbf16>, vector<8x8xf32> -> vector<8x8xf32>
    %cst_24 = arith.constant dense<0xFF800000> : vector<8xf32>
    %70 = vector.multi_reduction <maximumf>, %69, %cst_24 [1] : vector<8x8xf32> to vector<8xf32>
    %71 = vector.shape_cast %70 : vector<8xf32> to vector<8x1xf32>
    %72 = vector.broadcast %71 : vector<8x1xf32> to vector<8x8xf32>
    %73 = arith.subf %69, %72 : vector<8x8xf32>
    %74 = math.exp %73 : vector<8x8xf32>
    %cst_25 = arith.constant dense<0.000000e+00> : vector<8xf32>
    %75 = vector.multi_reduction <add>, %74, %cst_25 [1] : vector<8x8xf32> to vector<8xf32>
    %76 = vector.shape_cast %75 : vector<8xf32> to vector<8x1xf32>
    %77 = tpu.reciprocal %76 {approx = true} : vector<8x1xf32> -> vector<8x1xf32>
    %78 = vector.broadcast %77 : vector<8x1xf32> to vector<8x8xf32>
    %79 = arith.mulf %74, %78 : vector<8x8xf32>
    %80 = arith.truncf %79 : vector<8x8xf32> to vector<8x8xbf16>
    %cst_26 = arith.constant dense<0.000000e+00> : vector<8x8xf32>
    %81 = tpu.matmul %80, %68, %cst_26 {dimension_numbers = #tpu.dot_dimension_numbers<[1], [0], [0], [1], [0, 0, 1, 1], [], []>} : vector<8x8xbf16>, vector<8x8xbf16>, vector<8x8xf32> -> vector<8x8xf32>
    %c0_27 = arith.constant 0 : index
    %c24 = arith.constant 24 : index
    %82 = vector.load %arg8[%c0_27, %c24] : memref<8x32xf32, #tpu.memory_space<vmem>>, vector<8x8xf32>
    tpu.vector_store %arg8[%c0_27, %c24], %81 {strides = array<i32>} : memref<8x32xf32, #tpu.memory_space<vmem>>, vector<8x8xf32>,
    %c0_28 = arith.constant 0 : index
    %c0_29 = arith.constant 0 : index
    %83 = vector.load %arg8[%c0_28, %c0_29] : memref<8x32xf32, #tpu.memory_space<vmem>>, vector<8x32xf32>
    %84 = arith.truncf %83 : vector<8x32xf32> to vector<8x32xbf16>
    %c0_30 = arith.constant 0 : index
    %c0_31 = arith.constant 0 : index
    %85 = vector.load %arg5[%c0_30, %c0_31] : memref<32x32xbf16, #tpu.memory_space<vmem>>, vector<32x32xbf16>
    %cst_32 = arith.constant dense<0.000000e+00> : vector<8x32xf32>
    %86 = tpu.matmul %84, %85, %cst_32 {dimension_numbers = #tpu.dot_dimension_numbers<[1], [0], [0], [1], [0, 0, 1, 1], [], []>} : vector<8x32xbf16>, vector<32x32xbf16>, vector<8x32xf32> -> vector<8x32xf32>
    %c0_33 = arith.constant 0 : index
    %c0_34 = arith.constant 0 : index
    %87 = vector.load %arg6[%c0_33, %c0_34] : memref<1x32xf32, #tpu.memory_space<vmem>>, vector<1x32xf32>
    %88 = vector.broadcast %87 : vector<1x32xf32> to vector<8x32xf32>
    %89 = arith.addf %86, %88 : vector<8x32xf32>
    %c0_35 = arith.constant 0 : index
    %c0_36 = arith.constant 0 : index
    %c0_37 = arith.constant 0 : index
    %90 = vector.load %arg7[%c0_35, %c0_36, %c0_37] : memref<1x8x32xf32, #tpu.memory_space<vmem>>, vector<1x8x32xf32>
    %91 = vector.shape_cast %90 : vector<1x8x32xf32> to vector<8x32xf32>
    %92 = vector.shape_cast %89 : vector<8x32xf32> to vector<1x8x32xf32>
    tpu.vector_store %arg7[%c0_35, %c0_36, %c0_37], %92 {strides = array<i32>} : memref<1x8x32xf32, #tpu.memory_space<vmem>>, vector<1x8x32xf32>,
    return
  }
  func.func @transform_0(%arg0: i32, %arg1: i32) -> (i32, i32, i32) {
    %c0_i32 = arith.constant 0 : i32
    %c0_i32_0 = arith.constant 0 : i32
    %c0_i32_1 = arith.constant 0 : i32
    return %arg0, %c0_i32, %c0_i32_0 : i32, i32, i32
  }
  func.func @transform_1(%arg0: i32, %arg1: i32) -> (i32, i32) {
    %c0_i32 = arith.constant 0 : i32
    %c0_i32_0 = arith.constant 0 : i32
    %c0_i32_1 = arith.constant 0 : i32
    return %c0_i32, %c0_i32_0 : i32, i32
  }
  func.func @transform_2(%arg0: i32, %arg1: i32) -> (i32, i32) {
    %c0_i32 = arith.constant 0 : i32
    %c0_i32_0 = arith.constant 0 : i32
    %c0_i32_1 = arith.constant 0 : i32
    return %c0_i32, %c0_i32_0 : i32, i32
  }
  func.func @transform_3(%arg0: i32, %arg1: i32) -> (i32, i32) {
    %c0_i32 = arith.constant 0 : i32
    %c0_i32_0 = arith.constant 0 : i32
    %c0_i32_1 = arith.constant 0 : i32
    return %c0_i32, %c0_i32_0 : i32, i32
  }
  func.func @transform_4(%arg0: i32, %arg1: i32) -> (i32, i32) {
    %c0_i32 = arith.constant 0 : i32
    %c0_i32_0 = arith.constant 0 : i32
    %c0_i32_1 = arith.constant 0 : i32
    return %c0_i32, %c0_i32_0 : i32, i32
  }
  func.func @transform_5(%arg0: i32, %arg1: i32) -> (i32, i32, i32) {
    %c0_i32 = arith.constant 0 : i32
    %c0_i32_0 = arith.constant 0 : i32
    return %arg0, %arg1, %c0_i32 : i32, i32, i32
  }
}

</mosaic_0001>

<bundles_post_ra>
// kernel: tpu_custom_call.1
= control target key start
LH: loop header
LB: loop body
LE: loop exit
PB: predicated region body
PF: predicated region fallthrough
CT: control target
= control target key end

     0   :  { %10 = vsyncpa [#allocation4], 0  ;;  %s1313_s0 = inlined_call_operand.hbm [shape: bf16[2,8,32], index: 0, kind: input, shape index: {}]   ;;  %s1314_s1 = inlined_call_operand.hbm [shape: bf16[32,96], index: 1, kind: input, shape index: {}]   ;;  %s1315_s2 = inlined_call_operand.vmem [shape: f32[1,96], index: 2, kind: input, shape index: {}]   ;;  %s1316_s3 = inlined_call_operand.hbm [shape: bf16[32,32], index: 3, kind: input, shape index: {}]   ;;  %s1317_s4 = inlined_call_operand.vmem [shape: f32[1,32], index: 4, kind: input, shape index: {}]   ;;  %s1318_s5 = inlined_call_operand.hbm [shape: f32[2,8,32], index: 5, kind: output, shape index: {}]  }
   0x1   :  { %12 = vsyncpa [#allocation4 + $0x1], 0 }
   0x2   :  { %13 = vsyncpa [#allocation7], 0 }
   0x3   :  { %14 = vsyncpa [#allocation5], 0 }
   0x4   :  { %16 = vsyncpa [#allocation5 + $0x1], 0  ;;  %s1124_s18 = smov 0   ;;  %s1126_s19 = smov 0  }
   0x5   :  { %s1128_s20 = smov 0   ;;  %s1130_s21 = smov 0  }
   0x6   :  { %s1132_s22 = smov 0   ;;  %s1134_s23 = smov 0  }
   0x7 LB: > { %s734_s24 = sadd.s32 4294967295, %s1074_s23   ;;  %p736_p0 = scmp.ge.s32.totalorder %s1074_s23, 1  ;;  %s1074_s23 = sphi %s1134_s23, %s22_s23   ;;  %s1070_s22 = sphi %s1132_s22, %s1328_s22   ;;  %s1066_s21 = sphi %s1130_s21, %s1327_s21   ;;  %s1062_s20 = sphi %s1128_s20, %s1326_s20   ;;  %s1058_s19 = sphi %s1126_s19, %s1325_s19   ;;  %s1054_s18 = sphi %s1124_s18, %s1324_s18  }
   0x8   : > { %p1158_p1 = scmp.eq.s32.totalorder %s734_s24, 0  ;;  %p177_p2 = scmp.lt.s32.totalorder %s1074_s23, 3 }
   0x9   : > { %s188_s28 = sshll.u32 %s1314_s1, 4  ;;  %s1076_s30 = smov [#allocation6]   ;;  %s189_s28 = int_to_ptr.hbm [resolvable:$true] %s188_s28 }
   0xa   : > { %p1166_p3 = pnand %p736_p0, %p177_p2  ;;  %s190_s6 = sshll.u32 %s1076_s30, 4  ;;  %s191_s6 = int_to_ptr.vmem [resolvable:$true] %s190_s6 }
   0xb   : > { %p739_p6 = scmp.ge.s32.totalorder %s1074_s23, 2  ;;  %s205_s9 = sshll.u32 %s1316_s3, 4  ;;  %s206_s9 = int_to_ptr.hbm [resolvable:$true] %s205_s9 }
   0xc   : > { %p793_p4 = pneg %p1166_p3  ;;  %s1077_s10 = smov 64  }
   0xd   : > { %s1078_s11 = smov 4   ;;  %s1079_s12 = smov [#allocation8]  }
   0xe   : > { %p794_p5 = pnand %p793_p4, %p1158_p1  ;;  %s207_s13 = sshll.u32 %s1079_s12, 4  ;;  %s208_s13 = int_to_ptr.vmem [resolvable:$true] %s207_s13 }
   0xf   : > { %s34_s14 = sadd.s32 1, %s1070_s22  ;;  %s735_s15 = sadd.s32 4294967294, %s1074_s23  }
  0x10   : > { %796 = dma.hbm_to_vmem [thread:$0]  (!%p794_p5), %s189_s28, 256, %s191_s6, [#allocation7], %s1077_s10, %s1077_s10, %s1078_s11  }
  0x11   : > { %799 = dma.hbm_to_vmem [thread:$0]  (!%p794_p5), %s206_s9, 256, %s208_s13, [#allocation7], %s1077_s10, %s1077_s10, %s1078_s11  }
  0x12   : > { %p36_p7 = scmp.ge.s32.totalorder %s34_s14, 2  ;;  %s41_s16 = sadd.s32 1, %s1062_s20 }
  0x13   : > { %p48_p8 = scmp.ne.s32.totalorder %s1062_s20, %s1058_s19  ;;  %p49_p9 = scmp.eq.s32.totalorder %s1074_s23, 0 }
  0x14   : > { %s1330_s14 = smov (%p36_p7, %s34_s14), 0  ;;  %p54_p10 = scmp.ne.s32.totalorder %s1058_s19, %s1054_s18 }
  0x15   : > { %s38_s17 = ssub.s32 %s1070_s22, %s1330_s14  ;;  %p164_p11 = scmp.eq.s32.totalorder %s734_s24, 1 }
  0x16   : > { %p39_p12 = scmp.eq.s32.totalorder %s38_s17, 0  ;;  %p1194_p13 = por %p1158_p1, %p54_p10 }
  0x17   : > { %p1198_p0 = por %p164_p11, %p48_p8  ;;  %p170_p2 = scmp.eq.s32.totalorder %s735_s15, 1 }
  0x18   : > { %s1203_s28 = scalar_select %p39_p12, %s1062_s20, %s41_s16  }
  0x19   : > { %p50_p4 = por %p49_p9, %p48_p8  ;;  %p1205_p5 = por %p170_p2, %p54_p10 }
  0x1a   : > { %s224_s6 = sand.u32 1, %s1062_s20   ;;  %s741_s24 = sshll.u32 %s1070_s22, 2 }
  0x1b   : > { %p810_p7 = scmp.lt.s32.totalorder %s1074_s23, 2  ;;  %s740_s7 = sshll.u32 %s224_s6, 2 }
  0x1c   : > { %s232_s10 = scalar_lea.hbm %s1313_s0, %s741_s24  ;;  %s228_s12 = scalar_lea.vmem [#allocation3], %s740_s7 }
  0x1d   : > { %s234_s11 = sshll.u32 %s232_s10, 4  ;;  %s236_s13 = sshll.u32 %s228_s12, 4  ;;  %s235_s11 = int_to_ptr.hbm [resolvable:$true] %s234_s11  ;;  %s237_s13 = int_to_ptr.vmem [resolvable:$true] %s236_s13 }
  0x1e   : > { %p801_p11 = pnand %p810_p7, %p50_p4  ;;  %s225_s15 = scalar_lea.sflag [#allocation4], %s224_s6 }
  0x1f   : > { %245 = sbr.rel (%p1166_p3) target bundleno = 1123 (0x463), region = 40  ;;  %s1218_s16 = sand.u32 (!%p1166_p3), 1, %s1058_s19  }
  0x20   : > { %803 = dma.hbm_to_vmem [thread:$0]  (!%p801_p11), %s235_s11, 64, %s237_s13, %s225_s15  }
  0x21   : > { %s743_s17 = sshll.u32 (!%p1166_p3), %s1218_s16, 2  ;;  %s248_s8 = scalar_lea.sflag (!%p1166_p3), [#allocation4], %s1218_s16 }
  0x22   : > { %s251_s24 = scalar_lea.vmem (!%p1166_p3), [#allocation3], %s743_s17 }
  0x24   : > { %1041 = dma.done.wait (%p1194_p13), %s248_s8, 64  }
  0x25   : > { %1043 = vsyncadd (%p1194_p13), %s248_s8, 4294967232 }
  0x26   : > { %1045 = dma.done.wait (%p1158_p1), [#allocation7], 512  }
  0x27   : > { %1047 = vsyncadd (%p1158_p1), [#allocation7], 4294966784  ;;  %v778_v0 = vld [vmem:[#allocation6 + $0x8] sm:$0xff]  ;;  %v777_v1 = vld [vmem:[#allocation6] sm:$0xff]  ;;  %vm311_vm0 = vcmask 261120   ;;  %s1080_s25 = smov 96  }
  0x28   : > { %321 = vmatpush.bf16.msra.mxu0 %v778_v0  ;;  %v290_v2 = vld [vmem:[%s251_s24] sm:$0xf]  ;;  %v880_v3 = vld [vmem:[%s1315_s2] ss:$0 sm:$0xff]  ;;  %s1081_s26 = smov 104   ;;  %s1082_s7 = smov 120  }
  0x29   : > { %s1083_s9 = smov 88   ;;  %s1084_s10 = smov 80   ;;  %vm336_vm1 = vcmask 64512   ;;  %vm373_vm2 = vcmask 1043456   ;;  %vm454_vm3 = vcmask 130112   ;;  %vm516_vm4 = vcmask 195712  }
  0x2a   : > { %s1085_s11 = smov 72   ;;  %s1086_s12 = smov 112   ;;  %vm578_vm5 = vcmask 261312  }
  0x2b   : > { %s1087_s13 = smov 64   ;;  %s1088_s15 = smov 40  }
  0x2c   : > { %322 = vmatpush.bf16.msra.mxu0 %v777_v1  ;;  %s1089_s17 = smov 56   ;;  %s1090_s8 = smov 48  }
  0x2d   : > { %s1091_s24 = smov 8   ;;  %s1092_s29 = smov 16  }
  0x2e   : > { %s1093_s6 = smov 24  }
  0x2f   : > { %755 = vmatmul.msk.bf16.vlgmr.msra.gmra.mxu0 %vm311_vm0, %v290_v2 }
  0xac   : > { %v324_v4 = vpop.f32.mrf.mxu0 }
  0xad   : > { %v325_v5 = vadd.f32 %v880_v3, %v324_v4 }
  0xaf   : > { %v328_v6 = vpack.c.bf16 %v325_v5, %v325_v5  ;;  %v329_v7 = vmul.f32 0.35355338, %v325_v5 }
  0xb1   : > { %v330_v8 = vpack.c.bf16 %v329_v7, %v329_v7  ;;  %v332_v9 = vunpack.c.l.b16 %v328_v6 }
  0xb3   : > { %v1234_v10 = vpack.c.b16 %v332_v9, %v332_v9  ;;  %v392_v11 = vunpack.c.l.b16 %v330_v8 }
  0xb4   : > { %v326_v12 = vpop.f32.mrf.mxu0 }
  0xb5   : > { %334 = vrot.lane.b32.xlu0 %v1234_v10, %s1080_s25  ;;  %v393_v13 = vpack.c.b16 %v392_v11, %v392_v11  ;;  %s774_s25 = sshll.u32 %s1066_s21, 3  ;;  %s620_s21 = scalar_lea.sflag [#allocation5], %s1218_s16 }
  0xb7   : > { %518 = vrot.lane.b32.xlu2 %v393_v13, %s1081_s26  ;;  %394 = vrot.lane.b32.xlu1 %v393_v13, %s1082_s7  ;;  %s746_s26 = sshll.u32 %s1218_s16, 3 }
  0xbd   : > { %396 = vrot.lane.b32.xlu0 %v1234_v10, %s1083_s9 }
  0xbf   : > { %458 = vrot.lane.b32.xlu2 %v1234_v10, %s1084_s10  ;;  %520 = vrot.lane.b32.xlu1 %v1234_v10, %s1085_s11  ;;  %s631_s10 = scalar_lea.hbm %s1318_s5, %s774_s25  ;;  %s1008_s25 = scalar_lea.hbm %s1318_s5, 16 }
  0xc5   : > { %456 = vrot.lane.b32.xlu0 %v393_v13, %s1086_s12 }
 0x111   : > { %v519_v14 = vpop.permute.xlu2 %518 }
 0x119   : > { %v459_v15 = vpop.permute.xlu2 %458 }
 0x11a   : > { %v464_v16 = vsel %vm336_vm1, %v459_v15, 0 }
 0x11b   : > { %473 = vmatpush.bf16.xpose.msrb.mxu0 %v464_v16 }
 0x127   : > { %v335_v17 = vpop.permute.xlu0 %334 }
 0x128   : > { %v341_v18 = vsel %vm336_vm1, %v335_v17, 0 }
 0x129   : > { %v395_v19 = vpop.permute.xlu1 %394  ;;  %350 = vmatpush.bf16.xpose.msra.mxu1 %v341_v18 }
 0x12f   : > { %v397_v20 = vpop.permute.xlu0 %396 }
 0x130   : > { %756 = vmatmul.msk.bf16.vlgmr.msra.gmra.mxu1 %vm336_vm1, %v330_v8  ;;  %v402_v21 = vsel %vm336_vm1, %v397_v20, 0 }
 0x131   : > { %v521_v22 = vpop.permute.xlu1 %520  ;;  %411 = vmatpush.bf16.xpose.msra.mxu3 %v402_v21 }
 0x132   : > { %v526_v23 = vsel %vm336_vm1, %v521_v22, 0 }
 0x137   : > { %v457_v24 = vpop.permute.xlu0 %456 }
 0x138   : > { %758 = vmatmul.msk.bf16.vlgmr.msra.gmra.mxu3 %vm336_vm1, %v395_v19  ;;  %760 = vmatmul.msk.bf16.vlgmr.msrb.gmra.mxu0 %vm336_vm1, %v457_v24 }
 0x139   : > { %535 = vmatpush.bf16.xpose.msrb.mxu3 %v526_v23 }
 0x148   : > { %762 = vmatmul.msk.bf16.vlgmr.msrb.gmra.mxu3 %vm336_vm1, %v519_v14 }
 0x1ad   : > { %v352_v25 = vpop.f32.mrf.mxu1 }
 0x1ae   : > { %v356_v26 = vsel %vm336_vm1, %v352_v25, -inf }
 0x1af   : > { %357 = vmax.xlane.f32.xlu1 %v356_v26  ;;  %v779_v26 = vld [vmem:[#allocation8] sm:$0xff] }
 0x1b5   : > { %v354_v27 = vpop.f32.mrf.mxu1  ;;  %v475_v28 = vpop.f32.mrf.mxu0 }
 0x1b6   : > { %v479_v33 = vsel %vm336_vm1, %v475_v28, -inf }
 0x1bb   : > { %v413_v29 = vpop.f32.mrf.mxu3 }
 0x1bc   : > { %v417_v30 = vsel %vm336_vm1, %v413_v29, -inf }
 0x1bd   : > { %418 = vmax.xlane.f32.xlu2 %v417_v30  ;;  %v477_v31 = vpop.f32.mrf.mxu0 }
 0x1c3   : > { %v415_v32 = vpop.f32.mrf.mxu3 }
 0x1c4   : > { %v881_v32 = vld [vmem:[%s1317_s4] ss:$0 sm:$0xff] }
 0x1c5   : > { %480 = vmax.xlane.f32.xlu2 %v479_v33 }
 0x1cb   : > { %v537_v34 = vpop.f32.mrf.mxu3 }
 0x1cc   : > { %v541_v35 = vsel %vm336_vm1, %v537_v34, -inf }
 0x1cd   : > { %542 = vmax.xlane.f32.xlu0 %v541_v35 }
 0x1d3   : > { %v539_v36 = vpop.f32.mrf.mxu3 }
 0x1dd   : > { %368 = vrot.lane.b32.xlu2 %v1234_v10, %s1087_s13  ;;  %s288_s13 = scalar_lea.vmem [#allocation9], %s746_s26 }
 0x1e5   : > { %553 = vrot.lane.b32.xlu2 %v1234_v10, %s1088_s15  ;;  %s633_s15 = sshll.u32 %s288_s13, 4  ;;  %s634_s15 = int_to_ptr.vmem [resolvable:$true] %s633_s15 }
 0x222   : > { %v358_v37 = vpop.xlane.xlu1 %357 }
 0x223   : > { %v359_v38 = vsub.f32 %v352_v25, %v358_v37  ;;  %v780_v25 = vld [vmem:[#allocation8 + $0x8] sm:$0xff] }
 0x224   : > { %611 = vmatpush.bf16.msra.mxu0 %v780_v25 }
 0x225   : > { %v360_v39 = vmul.f32 1.442695, %v359_v38 }
 0x227   : > { %882 = vpow2.f32 %v360_v39 }
 0x228   : > { %612 = vmatpush.bf16.msra.mxu0 %v779_v26 }
 0x22d   : > { %v883_v40 = vpop.eup %882 }
 0x22e   : > { %v362_v41 = vsel %vm336_vm1, %v883_v40, 0.0 }
 0x22f   : > { %363 = vadd.xlane.f32.xlu1 %v362_v41 }
 0x230   : > { %v419_v42 = vpop.xlane.xlu2 %418 }
 0x231   : > { %v420_v45 = vsub.f32 %v413_v29, %v419_v42 }
 0x233   : > { %v421_v47 = vmul.f32 1.442695, %v420_v45 }
 0x238   : > { %v481_v43 = vpop.xlane.xlu2 %480 }
 0x239   : > { %v482_v44 = vsub.f32 %v475_v28, %v481_v43 }
 0x23b   : > { %v483_v46 = vmul.f32 1.442695, %v482_v44 }
 0x23d   : > { %884 = vpow2.f32 %v483_v46 }
 0x23e   : > { %886 = vpow2.f32 %v421_v47 }
 0x240   : > { %v369_v48 = vpop.permute.xlu2 %368  ;;  %v543_v49 = vpop.xlane.xlu0 %542 }
 0x241   : > { %v375_v50 = vsel %vm373_vm2, %v369_v48, 0  ;;  %v544_v52 = vsub.f32 %v537_v34, %v543_v49 }
 0x242   : > { %384 = vmatpush.bf16.msra.mxu2 %v375_v50 }
 0x243   : > { %v885_v51 = vpop.eup %884  ;;  %v545_v54 = vmul.f32 1.442695, %v544_v52 }
 0x244   : > { %v485_v53 = vsel %vm336_vm1, %v885_v51, 0.0  ;;  %v887_v55 = vpop.eup %886 }
 0x245   : > { %486 = vadd.xlane.f32.xlu0 %v485_v53  ;;  %888 = vpow2.f32 %v545_v54  ;;  %v423_v56 = vsel %vm336_vm1, %v887_v55, 0.0 }
 0x248   : > { %429 = vrot.lane.b32.xlu1 %v1234_v10, %s1089_s17  ;;  %v554_v0 = vpop.permute.xlu2 %553  ;;  %s635_s17 = sshll.u32 %s631_s10, 4  ;;  %s636_s17 = int_to_ptr.hbm [resolvable:$true] %s635_s17 }
 0x249   : > { %v559_v3 = vsel %vm373_vm2, %v554_v0, 0 }
 0x24b   : > { %v889_v57 = vpop.eup %888 }
 0x24c   : > { %v547_v58 = vsel %vm336_vm1, %v889_v57, 0.0 }
 0x24d   : > { %424 = vadd.xlane.f32.xlu0 %v423_v56 }
 0x255   : > { %548 = vadd.xlane.f32.xlu0 %v547_v58 }
 0x269   : > { %491 = vrot.lane.b32.xlu0 %v1234_v10, %s1090_s8  ;;  %s1002_s8 = sshra.s32 %s636_s17, 4  ;;  %s1003_s8 = int_to_ptr.hbm [resolvable:$true] %s1002_s8 }
 0x26a   : > { %p1009_p9 = scmp.lt.s32.totalorder %s1003_s8, %s1318_s5 }
 0x2a2   : > { %v364_v59 = vpop.xlane.xlu1 %363 }
 0x2a3   : > { %890 = vrcp.f32 %v364_v59 }
 0x2a9   : > { %v891_v60 = vpop.eup %890 }
 0x2aa   : > { %v366_v61 = vmul.f32 %v891_v60, %v883_v40 }
 0x2ac   : > { %v367_v62 = vpack.c.bf16 %v366_v61, %v366_v61 }
 0x2ae   : > { %757 = vmatmul.msk.bf16.vlgmr.msra.gmra.mxu2 %vm336_vm1, %v367_v62 }
 0x2b8   : > { %v487_v63 = vpop.xlane.xlu0 %486 }
 0x2ba   : > { %v430_v1 = vpop.permute.xlu1 %429 }
 0x2bb   : > { %v435_v2 = vsel %vm373_vm2, %v430_v1, 0 }
 0x2bc   : > { %444 = vmatpush.bf16.msrb.mxu2 %v435_v2 }
 0x2c0   : > { %568 = vmatpush.bf16.msra.mxu2 %v559_v3  ;;  %v425_v4 = vpop.xlane.xlu0 %424 }
 0x2c1   : > { %892 = vrcp.f32 %v425_v4 }
 0x2c7   : > { %v893_v5 = vpop.eup %892 }
 0x2c8   : > { %v427_v6 = vmul.f32 %v893_v5, %v887_v55  ;;  %v549_v7 = vpop.xlane.xlu0 %548 }
 0x2c9   : > { %894 = vrcp.f32 %v549_v7 }
 0x2ca   : > { %v428_v8 = vpack.c.bf16 %v427_v6, %v427_v6  ;;  %896 = vrcp.f32 %v487_v63 }
 0x2cc   : > { %759 = vmatmul.msk.bf16.vlgmr.msrb.gmra.mxu2 %vm336_vm1, %v428_v8 }
 0x2cf   : > { %v895_v9 = vpop.eup %894 }
 0x2d0   : > { %v551_v10 = vmul.f32 %v895_v9, %v889_v57  ;;  %v897_v11 = vpop.eup %896 }
 0x2d1   : > { %v489_v12 = vmul.f32 %v897_v11, %v885_v51 }
 0x2d2   : > { %v552_v13 = vpack.c.bf16 %v551_v10, %v551_v10 }
 0x2d3   : > { %v490_v16 = vpack.c.bf16 %v489_v12, %v489_v12 }
 0x2db   : > { %v492_v14 = vpop.permute.xlu0 %491 }
 0x2dc   : > { %763 = vmatmul.msk.bf16.vlgmr.msra.gmra.mxu2 %vm336_vm1, %v552_v13  ;;  %v497_v15 = vsel %vm373_vm2, %v492_v14, 0 }
 0x2dd   : > { %506 = vmatpush.bf16.msrb.mxu1 %v497_v15 }
 0x2e0   : > { %761 = vmatmul.msk.bf16.vlgmr.msrb.gmra.mxu1 %vm336_vm1, %v490_v16 }
 0x331   : > { %v386_v17 = vpop.f32.mrf.mxu2 }
 0x332   : > { %390 = vst.msk [vmem:[#allocation2] sm:$0xff] %vm336_vm1, %v386_v17 }
 0x339   : > { %v388_v18 = vpop.f32.mrf.mxu2 }
 0x34f   : > { %v446_v19 = vpop.f32.mrf.mxu2 }
 0x350   : > { %451 = vrot.lane.b32.xlu1 %v446_v19, %s1091_s24  ;;  %s1004_s24 = scalar_lea.hbm %s1003_s8, 8 }
 0x351   : > { %p1005_p1 = scmp.ne.s32.totalorder %s1003_s8, %s1004_s24  ;;  %p1010_p10 = scmp.lt.s32.totalorder %s1008_s25, %s1004_s24 }
 0x353   : > { %p1006_p3 = pnand %p1005_p1, %p1198_p0  ;;  %p1011_p12 = por %p1010_p10, %p1009_p9 }
 0x355   : > { %p1007_p8 = pneg %p1006_p3 }
 0x357   : > { %v448_v20 = vpop.f32.mrf.mxu2  ;;  %p1012_p13 = pnand %p1011_p12, %p1007_p8 }
 0x35d   : > { %v508_v21 = vpop.f32.mrf.mxu1 }
 0x35e   : > { %513 = vrot.lane.b32.xlu2 %v508_v21, %s1092_s29 }
 0x35f   : > { %v570_v22 = vpop.f32.mrf.mxu2 }
 0x360   : > { %575 = vrot.lane.b32.xlu1 %v570_v22, %s1093_s6 }
 0x365   : > { %v510_v23 = vpop.f32.mrf.mxu1 }
 0x367   : > { %v572_v24 = vpop.f32.mrf.mxu2 }
 0x3b8   : > { %v514_v28 = vpop.permute.xlu2 %513 }
 0x3c2   : > { %v452_v27 = vpop.permute.xlu1 %451 }
 0x3c3   : > { %455 = vst.msk [vmem:[#allocation2] sm:$0xff] %vm454_vm3, %v452_v27 }
 0x3c4   : > { %517 = vst.msk [vmem:[#allocation2] sm:$0xff] %vm516_vm4, %v514_v28 }
 0x3d2   : > { %v576_v29 = vpop.permute.xlu1 %575 }
 0x3d3   : > { %579 = vst.msk [vmem:[#allocation2] sm:$0xff] %vm578_vm5, %v576_v29 }
 0x3da   : > { %v580_v30 = vld [vmem:[#allocation2] sm:$0xff] }
 0x3db   : > { %v581_v31 = vpack.c.bf16 %v580_v30, %v580_v30 }
 0x3dd   : > { %772 = vmatmul.msk.bf16.vlgmr.msra.gmra.mxu0 %vm311_vm0, %v581_v31 }
 0x45a   : > { %v614_v33 = vpop.f32.mrf.mxu0 }
 0x45b   : > { %v615_v34 = vadd.f32 %v881_v32, %v614_v33 }
 0x45d   : > { %618 = vst.msk [vmem:[%s288_s13] sm:$0xff] %vm311_vm0, %v615_v34 }
 0x45e   : > { %1015 = shalt.err (!%p1012_p13)
}
 0x45f   : > { %791 = dma.vmem_to_hbm [thread:$0]  (%p1198_p0), %s634_s15, 128, %s636_s17, %s620_s21  }
 0x462   : > { %v616_v35 = vpop.f32.mrf.mxu0 }
 0x463 PF: > { %s647_s16 = sand.u32 1, %s1054_s18   ;;  %p805_p2 = pnand %p739_p6, %p1205_p5 }
 0x464   : > { %s648_s9 = scalar_lea.sflag [#allocation5], %s647_s16 }
 0x465   : > { %p806_p4 = pneg %p805_p2 }
 0x467   : > { %1049 = dma.done.wait (%p806_p4), %s648_s9, 128  }
 0x468   : > { %1051 = vsyncadd (%p806_p4), %s648_s9, 4294967168  ;;  %s22_s23 = sadd.s32 1, %s1074_s23   ;;  %s1324_s18 = smov %s1058_s19 }
 0x469   : > { %p19_p7 = scmp.ge.s32.totalorder %s22_s23, 4   ;;  %s1325_s19 = smov %s1062_s20 }
 0x46a   : > { %s1326_s20 = smov %s1203_s28  ;;  %s1327_s21 = smov %s1070_s22 }
 0x46b   : > { %s1328_s22 = smov %s1330_s14  ;;  %21 = sbr.rel (!%p19_p7) target bundleno = 7 (0x7), region = 93 }
 0x470   :  { %654 = vsyncpa [#allocation4], 1 }
 0x471   :  { %656 = vsyncpa [#allocation4 + $0x1], 1 }
 0x472   :  { %657 = vsyncpa [#allocation7], 1 }
 0x473   :  { %658 = vsyncpa [#allocation5], 1 }
 0x474   :  { %660 = vsyncpa [#allocation5 + $0x1], 1 }

</bundles_post_ra>
